<compile_context>
chip_gen: v7x
topology: tpu7x:2x2x1
jax: 0.10.0
libtpu: 0.0.40
codegen_flags: <defaults>
</compile_context>

<pallas_src>
import numpy as np
import jax
import jax.numpy as jnp
from jax.experimental import pallas as pl
from jax.experimental.pallas import tpu as pltpu


# ----------------------------------------------------------------------------
# Setup glue: CCT -> xy (Kang 2002) and Bradford adaptation matrix (3x3).
# ----------------------------------------------------------------------------
def cct_to_xy_kang2002(T):
    T = float(T)
    if not (1667.0 <= T <= 25000.0):
        raise ValueError("Kang 2002 is defined for 1667K <= T <= 25000K")
    if T <= 4000.0:
        x = (-0.2661239e9 / T**3 - 0.2343589e6 / T**2
             + 0.8776956e3 / T + 0.179910)
    else:
        x = (-3.0258469e9 / T**3 + 2.1070379e6 / T**2
             + 0.2226347e3 / T + 0.24039)
    if T <= 2222.0:
        y = -1.1063814 * x**3 - 1.34811020 * x**2 + 2.18555832 * x - 0.20219683
    elif T <= 4000.0:
        y = -0.9549476 * x**3 - 1.37418593 * x**2 + 2.09137015 * x - 0.16748867
    else:
        y = 3.0817580 * x**3 - 5.87338670 * x**2 + 3.75112997 * x - 0.37001483
    return x, y


def xy_to_xyz_whitepoint(xy):
    x, y = xy
    return np.array([x / y, 1.0, (1.0 - x - y) / y], dtype=np.float64)


_M_BFD = np.array(
    [[0.8951, 0.2664, -0.1614],
     [-0.7502, 1.7135, 0.0367],
     [0.0389, -0.0685, 1.0296]], dtype=np.float64)


def bradford_adaptation_matrix(test_temp, reference_temp):
    xyz_test = xy_to_xyz_whitepoint(cct_to_xy_kang2002(test_temp))
    xyz_ref = xy_to_xyz_whitepoint(cct_to_xy_kang2002(reference_temp))
    lms_test = _M_BFD @ xyz_test
    lms_ref = _M_BFD @ xyz_ref
    D = np.diag(lms_ref / lms_test)
    M = np.linalg.inv(_M_BFD) @ D @ _M_BFD
    return M.astype(np.float32)  # (3, 3)


# ----------------------------------------------------------------------------
# Pallas kernel: per-pixel 3x3 channel mix (VPU scalar-constant FMAs).
# ----------------------------------------------------------------------------
def _make_cat_kernel(M_np):
    # Bake the 3x3 matrix as Python float scalars (compile-time literals).
    m = [[float(M_np[i, j]) for j in range(3)] for i in range(3)]

    def kernel(x_ref, o_ref):
        # x_ref / o_ref block shape: (3, st, L); each channel is a dense
        # (8,128)-aligned (st, L) tile.
        x0 = x_ref[0].astype(jnp.float32)
        x1 = x_ref[1].astype(jnp.float32)
        x2 = x_ref[2].astype(jnp.float32)
        o_ref[0] = (m[0][0] * x0 + m[0][1] * x1 + m[0][2] * x2).astype(o_ref.dtype)
        o_ref[1] = (m[1][0] * x0 + m[1][1] * x1 + m[1][2] * x2).astype(o_ref.dtype)
        o_ref[2] = (m[2][0] * x0 + m[2][1] * x1 + m[2][2] * x2).astype(o_ref.dtype)

    return kernel


def _choose_spatial_tiling(P, itemsize, target_block_bytes):
    """Split P = R * L with L a lane-dense multiple of 128 (or full extent)
    and pick a sublane tile st (multiple of 8 or full extent) so that the
    per-block payload 3*st*L*itemsize is ~target_block_bytes."""
    L = None
    for cand in range(128, min(P, 1024) + 1, 128):
        if P % cand == 0:
            L = cand
    if L is None:
        L = P  # full extent is always a legal last block dim
    R = P // L

    st_cap = max(1, target_block_bytes // (3 * L * itemsize))
    st = None
    for cand in range(8, min(R, st_cap) + 1, 8):
        if R % cand == 0:
            st = cand
    if st is None:
        # Fall back to full extent (legal for any size).  For typical image
        # sizes R has a multiple-of-8 divisor, so this branch stays small.
        st = R
    return L, R, st


def temperature_shift_ciexyz(im, test_temp, reference_temp, *,
                             target_block_bytes=2 * 1024 * 1024):
    """im: (N, 3, H, W) CIEXYZ image. Returns the adapted (N, 3, H, W) image."""
    N, C, H, W = im.shape
    assert C == 3, "C channel must contain CIEXYZ coordinates"
    P = H * W

    itemsize = jnp.dtype(im.dtype).itemsize
    L, R, st = _choose_spatial_tiling(P, itemsize, target_block_bytes)

    M = bradford_adaptation_matrix(test_temp, reference_temp)
    kernel = _make_cat_kernel(M)

    x = im.reshape(N, C, R, L)

    block = (pl.Squeezed(), C, st, L)          # kernel sees (3, st, L)
    idx = lambda n, r: (n, 0, r, 0)

    out = pl.pallas_call(
        kernel,
        out_shape=jax.ShapeDtypeStruct((N, C, R, L), im.dtype),
        grid_spec=pltpu.PrefetchScalarGridSpec(
            num_scalar_prefetch=0,
            grid=(N, R // st),
            in_specs=[pl.BlockSpec(block, idx)],
            out_specs=pl.BlockSpec(block, idx),
        ),
        compiler_params=pltpu.CompilerParams(
            dimension_semantics=("parallel", "parallel"),
            vmem_limit_bytes=48 * 1024 * 1024,
        ),
    )(x)

    return out.reshape(N, C, H, W)


if __name__ == "__main__":
    test_temp = 4500.0
    reference_temp = 6500.0

    M = jnp.asarray(bradford_adaptation_matrix(test_temp, reference_temp))

    key = jax.random.PRNGKey(0)
    k1, k2 = jax.random.split(key)

    # Small CIEXYZ-ish image (matches the module's NCHW contract).
    im_small = jax.random.uniform(k1, (2, 3, 16, 16), dtype=jnp.float32)
    out_small = jax.block_until_ready(
        temperature_shift_ciexyz(im_small, test_temp, reference_temp))
    ref_small = jnp.einsum("ck,nkhw->nchw", M, im_small)
    assert out_small.shape == im_small.shape and out_small.dtype == im_small.dtype
    np.testing.assert_allclose(np.asarray(out_small), np.asarray(ref_small),
                               rtol=1e-5, atol=1e-5)

    # Second shape exercising the multi-row (sublane-tiled) path: R=8, L=1024.
    im_med = jax.random.uniform(k2, (1, 3, 64, 128), dtype=jnp.float32)
    out_med = jax.block_until_ready(
        temperature_shift_ciexyz(im_med, test_temp, reference_temp))
    ref_med = jnp.einsum("ck,nkhw->nchw", M, im_med)
    np.testing.assert_allclose(np.asarray(out_med), np.asarray(ref_med),
                               rtol=1e-5, atol=1e-5)

    print("KERNEL_OK")
</pallas_src>

<mosaic_0001>
module attributes {stable_mosaic.version = 11 : i64} {
  func.func @kernel(%arg0: i32, %arg1: i32, %arg2: memref<1x3x1x256xf32, #tpu.memory_space<vmem>>, %arg3: memref<1x3x1x256xf32, #tpu.memory_space<vmem>>) attributes {dimension_semantics = [#tpu.dimension_semantics<parallel>, #tpu.dimension_semantics<parallel>], iteration_bounds = array<i64: 2, 1>, scalar_prefetch = 0 : i64, scratch_operands = 0 : i64, tpu.core_type = #tpu.core_type<tc>, window_params = [{transform_indices = @transform_0, window_bounds = array<i64: 1, 3, 1, 256>}, {transform_indices = @transform_1, window_bounds = array<i64: 1, 3, 1, 256>}]} {
    %c0 = arith.constant 0 : index
    %c0_0 = arith.constant 0 : index
    %c0_1 = arith.constant 0 : index
    %c0_2 = arith.constant 0 : index
    %0 = vector.load %arg2[%c0, %c0_0, %c0_1, %c0_2] : memref<1x3x1x256xf32, #tpu.memory_space<vmem>>, vector<1x1x1x256xf32>
    %1 = vector.shape_cast %0 : vector<1x1x1x256xf32> to vector<1x256xf32>
    %c0_3 = arith.constant 0 : index
    %c1 = arith.constant 1 : index
    %c0_4 = arith.constant 0 : index
    %c0_5 = arith.constant 0 : index
    %2 = vector.load %arg2[%c0_3, %c1, %c0_4, %c0_5] : memref<1x3x1x256xf32, #tpu.memory_space<vmem>>, vector<1x1x1x256xf32>
    %3 = vector.shape_cast %2 : vector<1x1x1x256xf32> to vector<1x256xf32>
    %c0_6 = arith.constant 0 : index
    %c2 = arith.constant 2 : index
    %c0_7 = arith.constant 0 : index
    %c0_8 = arith.constant 0 : index
    %4 = vector.load %arg2[%c0_6, %c2, %c0_7, %c0_8] : memref<1x3x1x256xf32, #tpu.memory_space<vmem>>, vector<1x1x1x256xf32>
    %5 = vector.shape_cast %4 : vector<1x1x1x256xf32> to vector<1x256xf32>
    %cst = arith.constant 0.938271939 : f32
    %6 = vector.broadcast %cst : f32 to vector<1x256xf32>
    %7 = arith.mulf %6, %1 : vector<1x256xf32>
    %cst_9 = arith.constant -0.0336072072 : f32
    %8 = vector.broadcast %cst_9 : f32 to vector<1x256xf32>
    %9 = arith.mulf %8, %3 : vector<1x256xf32>
    %10 = arith.addf %7, %9 : vector<1x256xf32>
    %cst_10 = arith.constant 0.0937138572 : f32
    %11 = vector.broadcast %cst_10 : f32 to vector<1x256xf32>
    %12 = arith.mulf %11, %5 : vector<1x256xf32>
    %13 = arith.addf %10, %12 : vector<1x256xf32>
    %c0_11 = arith.constant 0 : index
    %c0_12 = arith.constant 0 : index
    %c0_13 = arith.constant 0 : index
    %c0_14 = arith.constant 0 : index
    %14 = vector.load %arg3[%c0_11, %c0_12, %c0_13, %c0_14] : memref<1x3x1x256xf32, #tpu.memory_space<vmem>>, vector<1x1x1x256xf32>
    %15 = vector.shape_cast %14 : vector<1x1x1x256xf32> to vector<1x256xf32>
    %16 = vector.shape_cast %13 : vector<1x256xf32> to vector<1x1x1x256xf32>
    tpu.vector_store %arg3[%c0_11, %c0_12, %c0_13, %c0_14], %16 {strides = array<i32>} : memref<1x3x1x256xf32, #tpu.memory_space<vmem>>, vector<1x1x1x256xf32>,
    %cst_15 = arith.constant -0.0410854891 : f32
    %17 = vector.broadcast %cst_15 : f32 to vector<1x256xf32>
    %18 = arith.mulf %17, %1 : vector<1x256xf32>
    %cst_16 = arith.constant 1.01715803 : f32
    %19 = vector.broadcast %cst_16 : f32 to vector<1x256xf32>
    %20 = arith.mulf %19, %3 : vector<1x256xf32>
    %21 = arith.addf %18, %20 : vector<1x256xf32>
    %cst_17 = arith.constant 0.0311212018 : f32
    %22 = vector.broadcast %cst_17 : f32 to vector<1x256xf32>
    %23 = arith.mulf %22, %5 : vector<1x256xf32>
    %24 = arith.addf %21, %23 : vector<1x256xf32>
    %c0_18 = arith.constant 0 : index
    %c1_19 = arith.constant 1 : index
    %c0_20 = arith.constant 0 : index
    %c0_21 = arith.constant 0 : index
    %25 = vector.load %arg3[%c0_18, %c1_19, %c0_20, %c0_21] : memref<1x3x1x256xf32, #tpu.memory_space<vmem>>, vector<1x1x1x256xf32>
    %26 = vector.shape_cast %25 : vector<1x1x1x256xf32> to vector<1x256xf32>
    %27 = vector.shape_cast %24 : vector<1x256xf32> to vector<1x1x1x256xf32>
    tpu.vector_store %arg3[%c0_18, %c1_19, %c0_20, %c0_21], %27 {strides = array<i32>} : memref<1x3x1x256xf32, #tpu.memory_space<vmem>>, vector<1x1x1x256xf32>,
    %cst_22 = arith.constant 0.0183120947 : f32
    %28 = vector.broadcast %cst_22 : f32 to vector<1x256xf32>
    %29 = arith.mulf %28, %1 : vector<1x256xf32>
    %cst_23 = arith.constant -0.0305415429 : f32
    %30 = vector.broadcast %cst_23 : f32 to vector<1x256xf32>
    %31 = arith.mulf %30, %3 : vector<1x256xf32>
    %32 = arith.addf %29, %31 : vector<1x256xf32>
    %cst_24 = arith.constant 1.49383235 : f32
    %33 = vector.broadcast %cst_24 : f32 to vector<1x256xf32>
    %34 = arith.mulf %33, %5 : vector<1x256xf32>
    %35 = arith.addf %32, %34 : vector<1x256xf32>
    %c0_25 = arith.constant 0 : index
    %c2_26 = arith.constant 2 : index
    %c0_27 = arith.constant 0 : index
    %c0_28 = arith.constant 0 : index
    %36 = vector.load %arg3[%c0_25, %c2_26, %c0_27, %c0_28] : memref<1x3x1x256xf32, #tpu.memory_space<vmem>>, vector<1x1x1x256xf32>
    %37 = vector.shape_cast %36 : vector<1x1x1x256xf32> to vector<1x256xf32>
    %38 = vector.shape_cast %35 : vector<1x256xf32> to vector<1x1x1x256xf32>
    tpu.vector_store %arg3[%c0_25, %c2_26, %c0_27, %c0_28], %38 {strides = array<i32>} : memref<1x3x1x256xf32, #tpu.memory_space<vmem>>, vector<1x1x1x256xf32>,
    return
  }
  func.func @transform_0(%arg0: i32, %arg1: i32) -> (i32, i32, i32, i32) {
    %c0_i32 = arith.constant 0 : i32
    %c0_i32_0 = arith.constant 0 : i32
    %c0_i32_1 = arith.constant 0 : i32
    return %arg0, %c0_i32, %arg1, %c0_i32_0 : i32, i32, i32, i32
  }
  func.func @transform_1(%arg0: i32, %arg1: i32) -> (i32, i32, i32, i32) {
    %c0_i32 = arith.constant 0 : i32
    %c0_i32_0 = arith.constant 0 : i32
    %c0_i32_1 = arith.constant 0 : i32
    return %arg0, %c0_i32, %arg1, %c0_i32_0 : i32, i32, i32, i32
  }
}

</mosaic_0001>

<bundles_post_ra>
// kernel: tpu_custom_call.1
= control target key start
LH: loop header
LB: loop body
LE: loop exit
PB: predicated region body
PF: predicated region fallthrough
CT: control target
= control target key end

     0   :  { %6 = vsyncpa [#allocation3], 0  ;;  %s673_s0 = inlined_call_operand.hbm [shape: f32[2,3,1,256], index: 0, kind: input, shape index: {}]   ;;  %s674_s1 = inlined_call_operand.hbm [shape: f32[2,3,1,256], index: 1, kind: output, shape index: {}]  }
   0x1   :  { %8 = vsyncpa [#allocation3 + $0x1], 0 }
   0x2   :  { %9 = vsyncpa [#allocation4], 0 }
   0x3   :  { %11 = vsyncpa [#allocation4 + $0x1], 0  ;;  %s498_s6 = smov 0   ;;  %s500_s7 = smov 0  }
   0x4   :  { %s502_s8 = smov 0   ;;  %s504_s9 = smov 0  }
   0x5   :  { %s506_s10 = smov 0   ;;  %s508_s11 = smov 0  }
   0x6 LB: > { %s285_s12 = sadd.s32 4294967295, %s480_s11   ;;  %s286_s13 = sadd.s32 4294967294, %s480_s11   ;;  %s480_s11 = sphi %s508_s11, %s17_s11   ;;  %s476_s10 = sphi %s506_s10, %s689_s10   ;;  %s472_s9 = sphi %s504_s9, %s688_s9   ;;  %s468_s8 = sphi %s502_s8, %s687_s8   ;;  %s464_s7 = sphi %s500_s7, %s686_s7   ;;  %s460_s6 = sphi %s498_s6, %s685_s6  }
   0x7   : > { %s29_s14 = sadd.s32 1, %s476_s10  ;;  %s38_s15 = sadd.s32 1, %s468_s8 }
   0x8   : > { %p31_p0 = scmp.ge.s32.totalorder %s29_s14, 2  ;;  %p45_p1 = scmp.ne.s32.totalorder %s468_s8, %s464_s7 }
   0x9   : > { %p46_p2 = scmp.eq.s32.totalorder %s480_s11, 0  ;;  %p51_p3 = scmp.ne.s32.totalorder %s464_s7, %s460_s6 }
   0xa   : > { %s691_s14 = smov (%p31_p0, %s29_s14), 0  ;;  %p52_p5 = scmp.eq.s32.totalorder %s285_s12, 0 }
   0xb   : > { %p539_p4 = por %p46_p2, %p45_p1  ;;  %s33_s17 = ssub.s32 %s476_s10, %s691_s14 }
   0xc   : > { %p77_p6 = scmp.eq.s32.totalorder %s285_s12, 1  ;;  %p36_p7 = scmp.eq.s32.totalorder %s33_s17, 0 }
   0xd   : > { %p545_p8 = por %p52_p5, %p51_p3  ;;  %p83_p10 = scmp.eq.s32.totalorder %s286_s13, 1 }
   0xe   : > { %p549_p9 = por %p77_p6, %p45_p1  ;;  %p314_p13 = scmp.lt.s32.totalorder %s480_s11, 2 }
   0xf   : > { %s554_s20 = scalar_select %p36_p7, %s468_s8, %s38_s15  }
  0x10   : > { %s678_s19 = scalar_select %p549_p9, 1, 0 }
  0x11   : > { %p556_p11 = por %p83_p10, %p51_p3  ;;  %s103_s22 = sand.u32 1, %s468_s8  }
  0x12   : > { %s298_s23 = smul.u32 6, %s103_s22  ;;  %p566_p0 = pnand %p314_p13, %p539_p4 }
  0x13   : > { %s679_s21 = scalar_select %p556_p11, 1, 0 }
  0x14   : > { %s299_s24 = smul.u32 96, %s476_s10  ;;  %s107_s29 = scalar_lea.vmem [#allocation2], %s298_s23 }
  0x15   : > { %s116_s30 = sshll.u32 %s107_s29, 4  ;;  %s578_s2 = scalar_lea.sflag [#allocation3], %s103_s22  ;;  %s575_s30 = int_to_ptr.vmem [resolvable:$true] %s116_s30 }
  0x16   : > { %s573_s28 = scalar_lea.hbm %s673_s0, %s299_s24  ;;  %p370_p3 = pneg %p566_p0 }
  0x17   : > { %s368_s3 = scalar_lea.hbm %s573_s28, 96  ;;  %s373_s12 = scalar_lea.hbm %s673_s0, 192 }
  0x18   : > { %p369_p2 = scmp.ne.s32.totalorder %s573_s28, %s368_s3  ;;  %p374_p6 = scmp.lt.u32.totalorder %s573_s28, %s673_s0 }
  0x19   : > { %p375_p7 = scmp.lt.u32.totalorder %s373_s12, %s368_s3  ;;  %p377_p13 = scmp.lt.u32.totalorder %s368_s3, %s573_s28 }
  0x1a   : > { %p371_p4 = pnand %p370_p3, %p369_p2 }
  0x1b   : > { %p376_p10 = por %p375_p7, %p374_p6 }
  0x1c   : > { %p372_p5 = pneg %p371_p4 }
  0x1d   : > { %p378_p12 = por %p377_p13, %p376_p10 }
  0x1f   : > { %p379_p1 = pnand %p378_p12, %p372_p5 }
  0x21   : > { %382 = shalt.err (!%p379_p1)
}
  0x22   : > { %s383_s16 = scalar_lea.vmem %s575_s30, 96  ;;  %s482_s17 = smov [#allocation2]  }
  0x23   : > { %p384_p2 = scmp.ne.s32.totalorder %s575_s30, %s383_s16  ;;  %s388_s22 = sshll.u32 %s482_s17, 4  ;;  %s389_s22 = int_to_ptr.vmem [resolvable:$false] %s388_s22 }
  0x24   : > { %s390_s23 = scalar_lea.vmem %s389_s22, 192  ;;  %p391_p9 = scmp.lt.s32.totalorder %s575_s30, %s389_s22 }
  0x25   : > { %p386_p4 = pnand %p384_p2, %p370_p3  ;;  %p392_p6 = scmp.lt.s32.totalorder %s390_s23, %s383_s16 }
  0x27   : > { %p387_p11 = pneg %p386_p4  ;;  %p393_p7 = por %p392_p6, %p391_p9 }
  0x29   : > { %p394_p10 = pnand %p393_p7, %p387_p11 }
  0x2b   : > { %397 = shalt.err (!%p394_p10)
}
  0x2c   : > { %s483_s24 = smov 32   ;;  %s484_s26 = smov 2  }
  0x2d   : > { %309 = dma.hbm_to_vmem [thread:$0]  (!%p566_p0), %s573_s28, 96, %s575_s30, %s578_s2, %s483_s24, %s483_s24, %s484_s26  }
  0x2e   : > { %p124_p12 = scmp.lt.s32.totalorder %s480_s11, 3  ;;  %p681_p1 = scmp.ge.s32.totalorder %s480_s11, 1 }
  0x30   : > { %p125_p3 = pnand %p681_p1, %p124_p12 }
  0x31   : > { %s610_s27 = sand.u32 (!%p125_p3), 1, %s464_s7  }
  0x32   : > { %128 = sbr.rel (%p125_p3) target bundleno = 87 (0x57), region = 24  ;;  %s131_s3 = scalar_lea.sflag (!%p125_p3), [#allocation3], %s610_s27 }
  0x33   : > { %s300_s29 = smul.u32 (!%p125_p3), 6, %s610_s27 }
  0x35   : > { %s134_s4 = scalar_lea.vmem (!%p125_p3), [#allocation2], %s300_s29 }
  0x39   : > { %451 = dma.done.wait (%p545_p8), %s131_s3, 96  }
  0x3a   : > { %453 = vsyncadd (%p545_p8), %s131_s3, 4294967200  ;;  %s152_s25 = scalar_lea.vmem [#allocation5], %s300_s29  ;;  %s301_s30 = smul.u32 96, %s472_s9  ;;  %v153_v0 = vld [vmem:[%s134_s4] sm:$0x3]  ;;  %v163_v3 = vlaneseq }
  0x3b   : > { %s198_s28 = sshll.u32 %s152_s25, 4  ;;  %v291_v1 = vld [vmem:[%s134_s4 + $0x2] sm:$0x3]  ;;  %v292_v2 = vld [vmem:[%s134_s4 + $0x4] sm:$0x3]  ;;  %s183_s5 = scalar_lea.sflag [#allocation4], %s610_s27  ;;  %s619_s28 = int_to_ptr.vmem [resolvable:$true] %s198_s28 }
  0x3c   : > { %v158_v4 = vmul.f32 0.93827194, %v153_v0  ;;  %v159_v5 = vmul.f32 -0.033607207, %v291_v1  ;;  %v161_v6 = vmul.f32 0.09371386, %v292_v2  ;;  %s624_s2 = scalar_lea.hbm %s674_s1, %s301_s30 }
  0x3d   : > { %v168_v7 = vmul.f32 -0.04108549, %v153_v0  ;;  %v169_v8 = vmul.f32 1.017158, %v291_v1  ;;  %v171_v9 = vmul.f32 0.031121202, %v292_v2 }
  0x3e   : > { %v160_v10 = vadd.f32 %v159_v5, %v158_v4  ;;  %v175_v11 = vmul.f32 0.018312095, %v153_v0  ;;  %v176_v12 = vmul.f32 -0.030541543, %v291_v1  ;;  %v178_v13 = vmul.f32 1.4938323, %v292_v2 }
  0x3f   : > { %vm165_vm0 = vcmp.lt.s32.totalorder %v163_v3, 256  ;;  %v170_v14 = vadd.f32 %v169_v8, %v168_v7  ;;  %s398_s12 = scalar_lea.vmem %s619_s28, 96  ;;  %p682_p9 = scmp.ne.s32.totalorder %s678_s19, 0 }
  0x40   : > { %v162_v15 = vadd.f32 %v161_v6, %v160_v10  ;;  %v177_v16 = vadd.f32 %v176_v12, %v175_v11  ;;  %p399_p8 = scmp.ne.s32.totalorder %s619_s28, %s398_s12  ;;  %s485_s13 = smov [#allocation5]  }
  0x41   : > { %v172_v17 = vadd.f32 %v171_v9, %v170_v14  ;;  %s402_s15 = sshll.u32 %s485_s13, 4  ;;  %s403_s15 = int_to_ptr.vmem [resolvable:$false] %s402_s15 }
  0x42   : > { %167 = vst.msk [vmem:[%s152_s25] sm:$0x3] %vm165_vm0, %v162_v15  ;;  %v179_v18 = vadd.f32 %v178_v13, %v177_v16  ;;  %p400_p11 = pnand %p399_p8, %p682_p9  ;;  %s404_s16 = scalar_lea.vmem %s403_s15, 192 }
  0x43   : > { %293 = vst.msk [vmem:[%s152_s25 + $0x2] sm:$0x3] %vm165_vm0, %v172_v17  ;;  %p405_p5 = scmp.lt.s32.totalorder %s619_s28, %s403_s15  ;;  %p406_p13 = scmp.lt.s32.totalorder %s404_s16, %s398_s12 }
  0x44   : > { %294 = vst.msk [vmem:[%s152_s25 + $0x4] sm:$0x3] %vm165_vm0, %v179_v18  ;;  %p401_p0 = pneg %p400_p11 }
  0x45   : > { %p407_p2 = por %p406_p13, %p405_p5 }
  0x47   : > { %p408_p4 = pnand %p407_p2, %p401_p0 }
  0x49   : > { %411 = shalt.err (!%p408_p4)
}
  0x4a   : > { %s412_s17 = scalar_lea.hbm %s624_s2, 96  ;;  %s416_s24 = scalar_lea.hbm %s674_s1, 192 }
  0x4b   : > { %p413_p6 = scmp.ne.s32.totalorder %s624_s2, %s412_s17  ;;  %p417_p12 = scmp.lt.u32.totalorder %s624_s2, %s674_s1 }
  0x4c   : > { %p418_p1 = scmp.lt.u32.totalorder %s416_s24, %s412_s17  ;;  %p420_p8 = scmp.lt.u32.totalorder %s412_s17, %s624_s2 }
  0x4d   : > { %p414_p7 = pnand %p413_p6, %p682_p9 }
  0x4e   : > { %p419_p3 = por %p418_p1, %p417_p12 }
  0x4f   : > { %p415_p10 = pneg %p414_p7 }
  0x50   : > { %p421_p11 = por %p420_p8, %p419_p3 }
  0x52   : > { %p422_p0 = pnand %p421_p11, %p415_p10 }
  0x54   : > { %425 = shalt.err (!%p422_p0)
}
  0x55   : > { %s486_s3 = smov 32   ;;  %s487_s4 = smov 2  }
  0x56   : > { %304 = dma.vmem_to_hbm [thread:$0]  (%p682_p9), %s619_s28, 96, %s624_s2, %s183_s5, %s486_s3, %s486_s3, %s487_s4  }
  0x57 PF: > { %s213_s25 = sand.u32 1, %s460_s6   ;;  %p683_p5 = scmp.ne.s32.totalorder %s679_s21, 0 }
  0x58   : > { %p684_p13 = scmp.ge.s32.totalorder %s480_s11, 2  ;;  %s214_s30 = scalar_lea.sflag [#allocation4], %s213_s25 }
  0x5a   : > { %p311_p2 = pnand %p684_p13, %p683_p5 }
  0x5c   : > { %455 = dma.done.wait (!%p311_p2), %s214_s30, 96  }
  0x5d   : > { %457 = vsyncadd (!%p311_p2), %s214_s30, 4294967200  ;;  %s17_s11 = sadd.s32 1, %s480_s11   ;;  %s685_s6 = smov %s464_s7 }
  0x5e   : > { %p14_p4 = scmp.ge.s32.totalorder %s17_s11, 4   ;;  %s686_s7 = smov %s468_s8 }
  0x5f   : > { %s687_s8 = smov %s554_s20  ;;  %s688_s9 = smov %s476_s10 }
  0x60   : > { %s689_s10 = smov %s691_s14  ;;  %16 = sbr.rel (!%p14_p4) target bundleno = 6 (0x6), region = 73 }
  0x67   :  { %219 = vsyncpa [#allocation3], 1 }
  0x68   :  { %221 = vsyncpa [#allocation3 + $0x1], 1 }
  0x69   :  { %222 = vsyncpa [#allocation4], 1 }
  0x6a   :  { %224 = vsyncpa [#allocation4 + $0x1], 1 }

</bundles_post_ra>
